<compile_context>
chip_gen: v5e
topology: v5e:2x2
jax: 0.10.0
libtpu: 0.0.40
codegen_flags: <defaults>
</compile_context>

<pallas_src>
import jax
import jax.numpy as jnp
import numpy as np
from jax import lax
from jax.experimental import pallas as pl
from jax.experimental.pallas import tpu as pltpu


def _round_up(n, m):
    return ((n + m - 1) // m) * m


def _make_linear_kernel(precision):
    """Kernel over a (TM, in_w) input block -> (TM, out_w) output block."""

    def kernel(scale_ref, bias_ref, x_ref, s_ref, o_ref):
        # Channel-sum + patch repack as a single lane-dense MXU matmul against
        # the constant 0/1 selection matrix (resident in VMEM across steps).
        acc = jnp.dot(x_ref[...], s_ref[...],
                      preferred_element_type=jnp.float32,
                      precision=precision)
        # scale (= w/3) and bias are f32 SMEM scalars: one VPU mul + add per vreg.
        o_ref[...] = (acc * scale_ref[0, 0] + bias_ref[0, 0]).astype(o_ref.dtype)

    return kernel


def _selection_matrix(pack, pp, dtype):
    """(pack*3*pp, pack*pp) 0/1 matrix: out[:, p*pp+q] = sum_c in[:, p*3*pp+c*pp+q]."""
    in_w, out_w = pack * 3 * pp, pack * pp
    s = np.zeros((in_w, out_w), dtype=np.float32)
    idx = np.arange(pp)
    for p in range(pack):
        for c in range(3):
            s[p * 3 * pp + c * pp + idx, p * pp + idx] = 1.0
    return jnp.asarray(s, dtype=dtype)        # 1.0 is exact in bf16 / f32


def linear_forward(x, param_w, param_b, *, image_size=16, patch_size=4,
                   block_rows=2048):
    """Forward pass of the `Linear` sanity-check module (see header comment)."""
    num_patches = (image_size // patch_size) ** 2
    pp = patch_size * patch_size
    chunk = 3 * pp                                 # one patch row: c0 | c1 | c2

    total = x.size
    if total % (num_patches * chunk) != 0:
        raise ValueError(
            f"input of size {total} is not reshapeable to "
            f"(-1, {num_patches}, 3, {patch_size}, {patch_size})")
    batch = total // (num_patches * chunk)
    m = batch * num_patches                        # number of patch rows
    x2 = x.reshape(m, chunk)                       # free row-major reshape

    # Pack patches along lanes so the output last dim is a full 128-lane vreg.
    if 128 % pp == 0 and m % (128 // pp) == 0:
        pack = 128 // pp                           # 8 for patch_size=4
    else:
        pack = 1                                   # rare; still correct via matmul
    rows = m // pack
    in_w = pack * chunk                            # 384 for the defaults
    out_w = pack * pp                              # 128 for the defaults
    xg = x2.reshape(rows, in_w)                    # free row-major reshape

    # Row tiling: blocks (8,128)-aligned, large enough to amortize per-step
    # overhead, and >= 2 grid steps whenever possible so the "parallel" axis
    # can shard across both v7x TensorCores.
    tm = min(block_rows, rows)
    if tm < rows:
        tm = max(8, (tm // 8) * 8)                 # multiple of 8, last block padded
    elif rows >= 16:
        tm = min(tm, _round_up(pl.cdiv(rows, 2), 8))
    grid = (pl.cdiv(rows, tm),)

    # Fold the 1/3 of the channel mean into the scalar weight.
    scale = (jnp.asarray(param_w, jnp.float32) / 3.0).reshape(1, 1)
    bias = jnp.asarray(param_b, jnp.float32).reshape(1, 1)
    sel = _selection_matrix(pack, pp, x.dtype)

    # f32 inputs need HIGHEST (multi-pass MXU) to keep f32-mean numerics;
    # bf16 inputs run natively at default precision with f32 accumulation.
    precision = (lax.Precision.HIGHEST
                 if jnp.dtype(x.dtype) == jnp.dtype(jnp.float32)
                 else lax.Precision.DEFAULT)

    itemsize = jnp.dtype(x.dtype).itemsize
    vmem_bytes = (2 * tm * (in_w + out_w) * itemsize      # double-buffered x / out
                  + 2 * in_w * out_w * itemsize           # selection matrix
                  + (2 << 20))                            # headroom
    cost = pl.CostEstimate(
        flops=2 * rows * in_w * out_w,
        transcendentals=0,
        bytes_accessed=(rows * (in_w + out_w) + in_w * out_w) * itemsize)

    out = pl.pallas_call(
        _make_linear_kernel(precision),
        out_shape=jax.ShapeDtypeStruct((rows, out_w), x.dtype),
        grid=grid,
        in_specs=[
            pl.BlockSpec(memory_space=pltpu.SMEM),          # scale = w / 3
            pl.BlockSpec(memory_space=pltpu.SMEM),          # bias
            pl.BlockSpec((tm, in_w), lambda i: (i, 0)),     # packed patch rows
            pl.BlockSpec((in_w, out_w), lambda i: (0, 0)),  # selection matrix (resident)
        ],
        out_specs=pl.BlockSpec((tm, out_w), lambda i: (i, 0)),
        compiler_params=pltpu.CompilerParams(
            dimension_semantics=("parallel",),
            vmem_limit_bytes=int(min(max(vmem_bytes, 16 << 20), 48 << 20))),
        cost_estimate=cost,
    )(scale, bias, xg, sel)

    # flatten(2, 3) in torch -> [B, num_patches, P*P]; free reshape.
    return out.reshape(batch, num_patches, pp)


def _reference(x, param_w, param_b, *, image_size=16, patch_size=4):
    num_patches = (image_size // patch_size) ** 2
    ref = x.astype(jnp.float32).reshape(-1, num_patches, 3, patch_size, patch_size)
    ref = jnp.float32(param_w) * ref.mean(axis=2) + jnp.float32(param_b)
    return ref.reshape(-1, num_patches, patch_size * patch_size)


if __name__ == "__main__":
    image_size, patch_size = 16, 4
    num_patches = (image_size // patch_size) ** 2       # 16
    inp_dim = 3 * patch_size * patch_size               # 48

    key = jax.random.PRNGKey(0)
    k1, k2, k3 = jax.random.split(key, 3)

    # 1) Module-default parameters (w=1, b=0), small batch, single grid step.
    B = 2
    x = jax.random.normal(k1, (B, num_patches, inp_dim), dtype=jnp.float32)
    out = linear_forward(x, 1.0, 0.0, image_size=image_size, patch_size=patch_size)
    out = jax.block_until_ready(out)
    ref = _reference(x, 1.0, 0.0, image_size=image_size, patch_size=patch_size)
    assert out.shape == (B, num_patches, patch_size * patch_size)
    assert jnp.allclose(out, ref, atol=1e-5, rtol=1e-5)

    # 2) Non-trivial w/b; rows=16 triggers the >=2-step split (both v7x TCs used).
    B2 = 8
    x2 = jax.random.normal(k2, (B2, num_patches, inp_dim), dtype=jnp.float32)
    out2 = linear_forward(x2, 0.5, -0.25, image_size=image_size,
                          patch_size=patch_size)
    out2 = jax.block_until_ready(out2)
    ref2 = _reference(x2, 0.5, -0.25, image_size=image_size, patch_size=patch_size)
    assert out2.shape == (B2, num_patches, patch_size * patch_size)
    assert jnp.allclose(out2, ref2, atol=1e-5, rtol=1e-5)

    # 3) bf16 path: MXU-native operands, f32 accumulation, bf16 output.
    B3 = 4
    x3 = jax.random.normal(k3, (B3, num_patches, inp_dim),
                           dtype=jnp.float32).astype(jnp.bfloat16)
    out3 = linear_forward(x3, 2.0, 0.125, image_size=image_size,
                          patch_size=patch_size)
    out3 = jax.block_until_ready(out3)
    ref3 = _reference(x3, 2.0, 0.125, image_size=image_size, patch_size=patch_size)
    assert out3.shape == (B3, num_patches, patch_size * patch_size)
    assert jnp.allclose(out3.astype(jnp.float32), ref3, atol=5e-2, rtol=5e-2)

    print("KERNEL_OK")
</pallas_src>

<mosaic_0001>
module attributes {stable_mosaic.version = 11 : i64} {
  func.func @kernel(%arg0: i32, %arg1: memref<1x1xf32, #tpu.memory_space<smem>>, %arg2: memref<1x1xf32, #tpu.memory_space<smem>>, %arg3: memref<4x384xf32, #tpu.memory_space<vmem>>, %arg4: memref<384x128xf32, #tpu.memory_space<vmem>>, %arg5: memref<4x128xf32, #tpu.memory_space<vmem>>) attributes {dimension_semantics = [#tpu.dimension_semantics<parallel>], iteration_bounds = array<i64: 1>, scalar_prefetch = 0 : i64, scratch_operands = 0 : i64, tpu.core_type = #tpu.core_type<tc>, window_params = [{transform_indices = @transform_0, window_bounds = array<i64: 1, 1>}, {transform_indices = @transform_1, window_bounds = array<i64: 1, 1>}, {transform_indices = @transform_2, window_bounds = array<i64: 4, 384>}, {pipeline_mode = #tpu.pipeline_mode<synchronous>, transform_indices = @transform_3, window_bounds = array<i64: 384, 128>}, {transform_indices = @transform_4, window_bounds = array<i64: 4, 128>}]} {
    %c0 = arith.constant 0 : index
    %c0_0 = arith.constant 0 : index
    %0 = vector.load %arg3[%c0, %c0_0] : memref<4x384xf32, #tpu.memory_space<vmem>>, vector<4x384xf32>
    %c0_1 = arith.constant 0 : index
    %c0_2 = arith.constant 0 : index
    %1 = vector.load %arg4[%c0_1, %c0_2] : memref<384x128xf32, #tpu.memory_space<vmem>>, vector<384x128xf32>
    %cst = arith.constant dense<0.000000e+00> : vector<4x128xf32>
    %2 = tpu.matmul %0, %1, %cst {dimension_numbers = #tpu.dot_dimension_numbers<[1], [0], [0], [1], [0, 0, 1, 1], [], []>, precision = #tpu.contract_precision<fp32>} : vector<4x384xf32>, vector<384x128xf32>, vector<4x128xf32> -> vector<4x128xf32>
    %c0_3 = arith.constant 0 : index
    %c0_4 = arith.constant 0 : index
    %3 = memref.load %arg1[%c0_3, %c0_4] : memref<1x1xf32, #tpu.memory_space<smem>>
    %4 = vector.broadcast %3 : f32 to vector<4x128xf32>
    %5 = arith.mulf %2, %4 : vector<4x128xf32>
    %c0_5 = arith.constant 0 : index
    %c0_6 = arith.constant 0 : index
    %6 = memref.load %arg2[%c0_5, %c0_6] : memref<1x1xf32, #tpu.memory_space<smem>>
    %7 = vector.broadcast %6 : f32 to vector<4x128xf32>
    %8 = arith.addf %5, %7 : vector<4x128xf32>
    %c0_7 = arith.constant 0 : index
    %c0_8 = arith.constant 0 : index
    %9 = vector.load %arg5[%c0_7, %c0_8] : memref<4x128xf32, #tpu.memory_space<vmem>>, vector<4x128xf32>
    tpu.vector_store %arg5[%c0_7, %c0_8], %8 {strides = array<i32>} : memref<4x128xf32, #tpu.memory_space<vmem>>, vector<4x128xf32>,
    return
  }
  func.func @transform_0(%arg0: i32) -> (i32, i32) {
    %c0_i32 = arith.constant 0 : i32
    %c0_i32_0 = arith.constant 0 : i32
    %c0_i32_1 = arith.constant 0 : i32
    return %c0_i32, %c0_i32_0 : i32, i32
  }
  func.func @transform_1(%arg0: i32) -> (i32, i32) {
    %c0_i32 = arith.constant 0 : i32
    %c0_i32_0 = arith.constant 0 : i32
    %c0_i32_1 = arith.constant 0 : i32
    return %c0_i32, %c0_i32_0 : i32, i32
  }
  func.func @transform_2(%arg0: i32) -> (i32, i32) {
    %c0_i32 = arith.constant 0 : i32
    %c0_i32_0 = arith.constant 0 : i32
    return %arg0, %c0_i32 : i32, i32
  }
  func.func @transform_3(%arg0: i32) -> (i32, i32) {
    %c0_i32 = arith.constant 0 : i32
    %c0_i32_0 = arith.constant 0 : i32
    %c0_i32_1 = arith.constant 0 : i32
    return %c0_i32, %c0_i32_0 : i32, i32
  }
  func.func @transform_4(%arg0: i32) -> (i32, i32) {
    %c0_i32 = arith.constant 0 : i32
    %c0_i32_0 = arith.constant 0 : i32
    return %arg0, %c0_i32 : i32, i32
  }
}

</mosaic_0001>

<bundles_post_ra>
// kernel: tpu_custom_call.1
= control target key start
LH: loop header
LB: loop body
LE: loop exit
PB: predicated region body
PF: predicated region fallthrough
CT: control target
= control target key end

     0   :  { %11 = vsyncpa [#allocation5], 0  ;;  %s2036_s0 = inlined_call_operand.<no memory space> [shape: f32[1,1], index: 0, kind: input, shape index: {}]   ;;  %s2037_s1 = inlined_call_operand.<no memory space> [shape: f32[1,1], index: 1, kind: input, shape index: {}]   ;;  %s2038_s2 = inlined_call_operand.hbm [shape: f32[4,384], index: 2, kind: input, shape index: {}]   ;;  %s2039_s3 = inlined_call_operand.hbm [shape: f32[384,128], index: 3, kind: input, shape index: {}]   ;;  %s2040_s4 = inlined_call_operand.hbm [shape: f32[4,128], index: 4, kind: output, shape index: {}]  }
   0x1   :  { %12 = vsyncpa [#allocation8], 0 }
   0x2   :  { %13 = vsyncpa [#allocation6], 0  ;;  %s23_s17 = sshll.u32 %s2038_s2, 4  ;;  %s1242_s18 = smov [#allocation4]   ;;  %s24_s17 = int_to_ptr.hbm [resolvable:$true] %s23_s17 }
   0x3   :  { %s25_s19 = sshll.u32 %s1242_s18, 4  ;;  %s33_s22 = sshll.u32 %s2039_s3, 4  ;;  %s26_s19 = int_to_ptr.vmem [resolvable:$true] %s25_s19  ;;  %s34_s22 = int_to_ptr.hbm [resolvable:$true] %s33_s22 }
   0x4   :  { %28 = dma.hbm_to_vmem [thread:$0]  %s24_s17, 192, %s26_s19, [#allocation5]  }
   0x5   :  { %s1243_s23 = smov [#allocation7]   ;;  %s1244_s25 = smov 128  }
   0x6   :  { %s35_s24 = sshll.u32 %s1243_s23, 4  ;;  %s1245_s26 = smov 8   ;;  %s36_s24 = int_to_ptr.vmem [resolvable:$true] %s35_s24 }
   0x7   :  { %41 = dma.hbm_to_vmem [thread:$0]  %s34_s22, 6144, %s36_s24, [#allocation8], %s1244_s25, %s1244_s25, %s1245_s26  }
   0x8   :  { %1236 = dma.done.wait [#allocation5], 192  }
   0x9   :  { %1237 = vsyncadd [#allocation5], 4294967104 }
   0xa   :  { %1238 = dma.done.wait [#allocation8], 6144  }
   0xb   :  { %1239 = vsyncadd [#allocation8], 4294961152  ;;  %v67_v0 = vld [vmem:[#allocation7 + $0x78] sm:$0xff]  ;;  %v66_v1 = vld [vmem:[#allocation7 + $0x70] sm:$0xff]  ;;  %s1246_s29 = smov [#allocation9]   ;;  %s1148_s7 = sshll.u32 %s2040_s4, 4  ;;  %s1149_s7 = int_to_ptr.hbm [resolvable:$true] %s1148_s7 }
   0xc   :  { %v65_v2 = vld [vmem:[#allocation7 + $0x68] sm:$0xff]  ;;  %v1278_v3 = vand.u32 4294901760, %v67_v0  ;;  %v1280_v4 = vand.u32 4294901760, %v66_v1  ;;  %v64_v6 = vld [vmem:[#allocation7 + $0x60] sm:$0xff]  ;;  %v63_v7 = vld [vmem:[#allocation7 + $0x58] sm:$0xff]  ;;  %s1146_s30 = sshll.u32 %s1246_s29, 4  ;;  %s1147_s30 = int_to_ptr.vmem [resolvable:$true] %s1146_s30 }
   0xd   :  { %v1282_v5 = vand.u32 4294901760, %v65_v2  ;;  %v62_v8 = vld [vmem:[#allocation7 + $0x50] sm:$0xff]  ;;  %v1284_v9 = vand.u32 4294901760, %v64_v6  ;;  %v1286_v10 = vand.u32 4294901760, %v63_v7  ;;  %v61_v12 = vld [vmem:[#allocation7 + $0x48] sm:$0xff]  ;;  %v60_v13 = vld [vmem:[#allocation7 + $0x40] sm:$0xff] }
   0xe   :  { %v1288_v11 = vand.u32 4294901760, %v62_v8  ;;  %112 = vmatpush.msra.mxu0 %v1278_v3  ;;  %v1292_v14 = vsub.f32 %v67_v0, %v1278_v3  ;;  %v1295_v15 = vsub.f32 %v66_v1, %v1280_v4  ;;  %308 = vmatpush.msra.mxu3 %v1278_v3  ;;  %v1301_v17 = vand.u32 4294901760, %v61_v12  ;;  %v59_v18 = vld [vmem:[#allocation7 + $0x38] sm:$0xff]  ;;  %v58_v26 = vld [vmem:[#allocation7 + $0x30] sm:$0xff]  ;;  %v57_v34 = vld [vmem:[#allocation7 + $0x28] sm:$0xff] }
   0xf   :  { %v1299_v16 = vsub.f32 %v65_v2, %v1282_v5  ;;  %v1304_v19 = vsub.f32 %v64_v6, %v1284_v9  ;;  %v1307_v20 = vsub.f32 %v63_v7, %v1286_v10  ;;  %v1317_v25 = vand.u32 4294901760, %v60_v13  ;;  %v56_v42 = vld [vmem:[#allocation7 + $0x20] sm:$0xff]  ;;  %v55_v48 = vld [vmem:[#allocation7 + $0x18] sm:$0xff]  ;;  %v54_v54 = vld [vmem:[#allocation7 + $0x10] sm:$0xff] }
  0x10   :  { %v1310_v21 = vsub.f32 %v62_v8, %v1288_v11  ;;  %114 = vmatpush.msra.mxu0 %v1280_v4  ;;  %255 = vmatpush.msra.mxu2 %v1292_v14  ;;  %v154_v22 = vand.u32 4294901760, %v1292_v14  ;;  %v2056_v23 = vand.u32 4294901760, %v1295_v15  ;;  %v1321_v28 = vand.u32 4294901760, %v59_v18  ;;  %v50_v55 = vld [vmem:[#allocation4] sm:$0xff]  ;;  %v53_v62 = vld [vmem:[#allocation7 + $0x8] sm:$0xff]  ;;  %v52_v6 = vld [vmem:[#allocation7] sm:$0xff] }
  0x11   :  { %v2054_v24 = vand.u32 4294901760, %v1299_v16  ;;  %310 = vmatpush.msra.mxu3 %v1280_v4  ;;  %v2052_v27 = vand.u32 4294901760, %v1304_v19  ;;  %v1324_v29 = vsub.f32 %v61_v12, %v1301_v17  ;;  %v2050_v33 = vand.u32 4294901760, %v1307_v20  ;;  %v83_v60 = vld [vmem:[#allocation7 + $0xf8] sm:$0xff]  ;;  %102 = vst [vmem:[#allocation1] ss:$2 sm:$0xff] %v50_v55 }
  0x12   :  { %116 = vmatpush.msra.mxu0 %v1282_v5  ;;  %258 = vmatpush.msra.mxu2 %v1295_v15  ;;  %v155_v30 = vsub.f32 %v1292_v14, %v154_v22  ;;  %v161_v31 = vsub.f32 %v1295_v15, %v2056_v23  ;;  %v1339_v35 = vand.u32 4294901760, %v58_v26  ;;  %v2048_v36 = vand.u32 4294901760, %v1310_v21  ;;  %v82_v7 = vld [vmem:[#allocation7 + $0xf0] sm:$0xff] }
  0x13   :  { %v167_v32 = vsub.f32 %v1299_v16, %v2054_v24  ;;  %312 = vmatpush.msra.mxu3 %v1282_v5  ;;  %v173_v39 = vsub.f32 %v1304_v19, %v2052_v27  ;;  %v1348_v40 = vsub.f32 %v60_v13, %v1317_v25  ;;  %v1351_v41 = vand.u32 4294901760, %v57_v34 }
  0x14   :  { %118 = vmatpush.msra.mxu0 %v1284_v9  ;;  %v156_v37 = vand.u32 4294901760, %v155_v30  ;;  %261 = vmatpush.msra.mxu2 %v1299_v16  ;;  %v162_v38 = vand.u32 4294901760, %v161_v31  ;;  %v179_v44 = vsub.f32 %v1307_v20, %v2050_v33  ;;  %v2047_v45 = vand.u32 4294901760, %v1324_v29 }
  0x15   :  { %314 = vmatpush.msra.mxu3 %v1284_v9  ;;  %v168_v43 = vand.u32 4294901760, %v167_v32  ;;  %v1359_v46 = vsub.f32 %v59_v18, %v1321_v28  ;;  %v185_v47 = vsub.f32 %v1310_v21, %v2048_v36  ;;  %v174_v49 = vand.u32 4294901760, %v173_v39 }
  0x16   :  { %120 = vmatpush.msra.mxu0 %v1286_v10  ;;  %157 = vmatpush.msra.mxu1 %v156_v37  ;;  %v1367_v50 = vand.u32 4294901760, %v56_v42  ;;  %v2046_v51 = vand.u32 4294901760, %v1348_v40  ;;  %v1371_v52 = vsub.f32 %v58_v26, %v1339_v35  ;;  %v1376_v53 = vsub.f32 %v57_v34, %v1351_v41  ;;  %v81_v34 = vld [vmem:[#allocation7 + $0xe8] sm:$0xff] }
  0x17   :  { %264 = vmatpush.msra.mxu2 %v1304_v19  ;;  %316 = vmatpush.msra.mxu3 %v1286_v10  ;;  %v180_v56 = vand.u32 4294901760, %v179_v44  ;;  %v191_v57 = vsub.f32 %v1324_v29, %v2047_v45  ;;  %v1382_v58 = vand.u32 4294901760, %v55_v48  ;;  %v2045_v59 = vand.u32 4294901760, %v1359_v46  ;;  %v76_v45 = vld [vmem:[#allocation7 + $0xc0] sm:$0xff] }
  0x18   :  { %122 = vmatpush.msra.mxu0 %v1288_v11  ;;  %163 = vmatpush.msra.mxu1 %v162_v38  ;;  %v186_v61 = vand.u32 4294901760, %v185_v47  ;;  %v197_v63 = vsub.f32 %v1348_v40, %v2046_v51  ;;  %v1391_v0 = vand.u32 4294901760, %v54_v54  ;;  %v2043_v1 = vand.u32 4294901760, %v1371_v52  ;;  %v80_v47 = vld [vmem:[#allocation7 + $0xe0] sm:$0xff] }
  0x19   :  { %267 = vmatpush.msra.mxu2 %v1307_v20  ;;  %318 = vmatpush.msra.mxu3 %v1288_v11  ;;  %v1395_v2 = vsub.f32 %v56_v42, %v1367_v50  ;;  %v2042_v8 = vand.u32 4294901760, %v1376_v53  ;;  %v1400_v12 = vand.u32 4294901760, %v83_v60  ;;  %v192_v13 = vand.u32 4294901760, %v191_v57 }
  0x1a   :  { %124 = vmatpush.msra.mxu0 %v1301_v17  ;;  %169 = vmatpush.msra.mxu1 %v168_v43  ;;  %v203_v18 = vsub.f32 %v1359_v46, %v2045_v59  ;;  %v1406_v26 = vand.u32 4294901760, %v53_v62  ;;  %v1409_v30 = vsub.f32 %v55_v48, %v1382_v58  ;;  %v1413_v31 = vand.u32 4294901760, %v52_v6 }
  0x1b   :  { %270 = vmatpush.msra.mxu2 %v1310_v21  ;;  %320 = vmatpush.msra.mxu3 %v1301_v17  ;;  %v1415_v32 = vand.u32 4294901760, %v82_v7  ;;  %v198_v37 = vand.u32 4294901760, %v197_v63  ;;  %v209_v38 = vsub.f32 %v1371_v52, %v2043_v1  ;;  %v2041_v39 = vand.u32 4294901760, %v1395_v2 }
  0x1c   :  { %126 = vmatpush.msra.mxu0 %v1317_v25  ;;  %175 = vmatpush.msra.mxu1 %v174_v49  ;;  %2060 = vst [vmem:[#allocation13_spill] sm:$0xff] %v1413_v31  ;;  %v1423_v42 = vsub.f32 %v54_v54, %v1391_v0  ;;  %v215_v43 = vsub.f32 %v1376_v53, %v2042_v8  ;;  %v204_v48 = vand.u32 4294901760, %v203_v18  ;;  %v2044_v49 = vand.u32 4294901760, %v1409_v30  ;;  %v78_v18 = vld [vmem:[#allocation7 + $0xd0] sm:$0xff] }
  0x1d   :  { %273 = vmatpush.msra.mxu2 %v1324_v29  ;;  %322 = vmatpush.msra.mxu3 %v1317_v25  ;;  %v1431_v44 = vsub.f32 %v83_v60, %v1400_v12  ;;  %v1436_v54 = vsub.f32 %v53_v62, %v1406_v26  ;;  %v1438_v55 = vand.u32 4294901760, %v81_v34  ;;  %v1446_v57 = vsub.f32 %v82_v7, %v1415_v32  ;;  %v79_v60 = vld [vmem:[#allocation7 + $0xd8] sm:$0xff] }
  0x1e   :  { %128 = vmatpush.msra.mxu0 %v1321_v28  ;;  %181 = vmatpush.msra.mxu1 %v180_v56  ;;  %v1443_v56 = vsub.f32 %v52_v6, %v1413_v31  ;;  %v221_v62 = vsub.f32 %v1395_v2, %v2041_v39  ;;  %v2049_v63 = vand.u32 4294901760, %v1423_v42  ;;  %v216_v6 = vand.u32 4294901760, %v215_v43  ;;  %v77_v43 = vld [vmem:[#allocation7 + $0xc8] sm:$0xff] }
  0x1f   :  { %276 = vmatpush.msra.mxu2 %v1348_v40  ;;  %324 = vmatpush.msra.mxu3 %v1321_v28  ;;  %v2051_v7 = vand.u32 4294901760, %v1431_v44  ;;  %v1464_v39 = vsub.f32 %v81_v34, %v1438_v55  ;;  %v1466_v8 = vand.u32 4294901760, %v79_v60  ;;  %v1479_v51 = vand.u32 4294901760, %v78_v18 }
  0x20   :  { %130 = vmatpush.msra.mxu0 %v1339_v35  ;;  %187 = vmatpush.msra.mxu1 %v186_v61  ;;  %v210_v61 = vand.u32 4294901760, %v209_v38  ;;  %v2053_v38 = vand.u32 4294901760, %v1436_v54  ;;  %v2057_v1 = vand.u32 4294901760, %v1443_v56  ;;  %v233_v34 = vsub.f32 %v1423_v42, %v2049_v63 }
  0x21   :  { %279 = vmatpush.msra.mxu2 %v1359_v46  ;;  %326 = vmatpush.msra.mxu3 %v1339_v35  ;;  %v496_v36 = vsub.f32 %v1431_v44, %v2051_v7  ;;  %v2058_v63 = vand.u32 4294901760, %v1464_v39  ;;  %v1494_v33 = vsub.f32 %v79_v60, %v1466_v8  ;;  %v1501_v27 = vand.u32 4294901760, %v76_v45 }
  0x22   :  { %132 = vmatpush.msra.mxu0 %v1351_v41  ;;  %193 = vmatpush.msra.mxu1 %v192_v13  ;;  %v1453_v13 = vand.u32 4294901760, %v80_v47  ;;  %v245_v60 = vsub.f32 %v1443_v56, %v2057_v1  ;;  %v1509_v24 = vsub.f32 %v78_v18, %v1479_v51  ;;  %v2061_v14 = vand.u32 4294901760, %v1295_v15 }
  0x23   :  { %282 = vmatpush.msra.mxu2 %v1371_v52  ;;  %328 = vmatpush.msra.mxu3 %v1351_v41  ;;  %v508_v1 = vsub.f32 %v1464_v39, %v2058_v63  ;;  %v2063_v15 = vand.u32 4294901760, %v1299_v16  ;;  %v2065_v16 = vand.u32 4294901760, %v1304_v19  ;;  %v2067_v19 = vand.u32 4294901760, %v1307_v20 }
  0x24   :  { %134 = vmatpush.msra.mxu0 %v1367_v50  ;;  %199 = vmatpush.msra.mxu1 %v198_v37  ;;  %v227_v37 = vsub.f32 %v1409_v30, %v2044_v49  ;;  %v222_v49 = vand.u32 4294901760, %v221_v62  ;;  %v1477_v59 = vsub.f32 %v80_v47, %v1453_v13  ;;  %v239_v47 = vsub.f32 %v1436_v54, %v2053_v38 }
  0x25   :  { %285 = vmatpush.msra.mxu2 %v1376_v53  ;;  %330 = vmatpush.msra.mxu3 %v1367_v50  ;;  %v2069_v20 = vand.u32 4294901760, %v1310_v21  ;;  %v2071_v21 = vand.u32 4294901760, %v1324_v29  ;;  %v2073_v29 = vand.u32 4294901760, %v1348_v40  ;;  %v2075_v40 = vand.u32 4294901760, %v1359_v46 }
  0x26   :  { %136 = vmatpush.msra.mxu0 %v1382_v58  ;;  %205 = vmatpush.msra.mxu1 %v204_v48  ;;  %v2055_v48 = vand.u32 4294901760, %v1446_v57  ;;  %v228_v62 = vand.u32 4294901760, %v227_v37  ;;  %v234_v37 = vand.u32 4294901760, %v233_v34  ;;  %v240_v34 = vand.u32 4294901760, %v239_v47 }
  0x27   :  { %288 = vmatpush.msra.mxu2 %v1395_v2  ;;  %332 = vmatpush.msra.mxu3 %v1382_v58  ;;  %v2062_v47 = vand.u32 4294901760, %v1477_v59 }
  0x28   :  { %138 = vmatpush.msra.mxu0 %v1391_v0  ;;  %211 = vmatpush.msra.mxu1 %v210_v61  ;;  %v1486_v61 = vand.u32 4294901760, %v77_v43  ;;  %v502_v7 = vsub.f32 %v1446_v57, %v2055_v48  ;;  %v497_v48 = vand.u32 4294901760, %v496_v36  ;;  %v1528_v36 = vsub.f32 %v76_v45, %v1501_v27 }
  0x29   :  { %291 = vmatpush.msra.mxu2 %v1409_v30  ;;  %334 = vmatpush.msra.mxu3 %v1391_v0  ;;  %v514_v63 = vsub.f32 %v1477_v59, %v2062_v47 }
  0x2a   :  { %140 = vmatpush.msra.mxu0 %v1406_v26  ;;  %217 = vmatpush.msra.mxu1 %v216_v6  ;;  %v75_v6 = vld [vmem:[#allocation7 + $0xb8] sm:$0xff]  ;;  %v1515_v23 = vsub.f32 %v77_v43, %v1486_v61  ;;  %v73_v43 = vld [vmem:[#allocation7 + $0xa8] sm:$0xff] }
  0x2b   :  { %294 = vmatpush.msra.mxu2 %v1423_v42  ;;  %336 = vmatpush.msra.mxu3 %v1406_v26  ;;  %v1522_v38 = vand.u32 4294901760, %v75_v6  ;;  %v1547_v18 = vand.u32 4294901760, %v73_v43 }
  0x2c   :  { %142 = vmatpush.msra.mxu0 %v1413_v31  ;;  %223 = vmatpush.msra.mxu1 %v222_v49  ;;  %v74_v49 = vld [vmem:[#allocation7 + $0xb0] sm:$0xff] }
  0x2d   :  { %297 = vmatpush.msra.mxu2 %v1436_v54  ;;  %338 = vmatpush.msra.mxu3 %v1413_v31  ;;  %v1535_v31 = vand.u32 4294901760, %v74_v49  ;;  %v1545_v47 = vsub.f32 %v75_v6, %v1522_v38 }
  0x2e   :  { %349 = vmatpush.msrb.mxu0 %v154_v22  ;;  %229 = vmatpush.msra.mxu1 %v228_v62  ;;  %v503_v22 = vand.u32 4294901760, %v502_v7  ;;  %v246_v62 = vand.u32 4294901760, %v245_v60  ;;  %v72_v7 = vld [vmem:[#allocation7 + $0xa0] sm:$0xff]  ;;  %v2064_v60 = vand.u32 4294901760, %v1494_v33 }
  0x2f   :  { %300 = vmatpush.msra.mxu2 %v1443_v56  ;;  %498 = vmatpush.msrb.mxu3 %v497_v48  ;;  %v1557_v6 = vsub.f32 %v74_v49, %v1535_v31  ;;  %v1559_v45 = vand.u32 4294901760, %v72_v7  ;;  %v1570_v49 = vsub.f32 %v73_v43, %v1547_v18 }
  0x30   :  { %353 = vmatpush.msrb.mxu0 %v2061_v14  ;;  %235 = vmatpush.msra.mxu1 %v234_v37  ;;  %v509_v37 = vand.u32 4294901760, %v508_v1  ;;  %v520_v14 = vsub.f32 %v1494_v33, %v2064_v60  ;;  %v515_v1 = vand.u32 4294901760, %v514_v63 }
  0x31   :  { %453 = vmatpush.msrb.mxu2 %v1400_v12  ;;  %504 = vmatpush.msrb.mxu3 %v503_v22  ;;  %v2068_v22 = vand.u32 4294901760, %v1515_v23  ;;  %v1583_v43 = vsub.f32 %v72_v7, %v1559_v45 }
  0x32   :  { %357 = vmatpush.msrb.mxu0 %v2063_v15  ;;  %241 = vmatpush.msra.mxu1 %v240_v34  ;;  %v71_v15 = vld [vmem:[#allocation7 + $0x98] sm:$0xff]  ;;  %v2066_v34 = vand.u32 4294901760, %v1509_v24  ;;  %v521_v63 = vand.u32 4294901760, %v520_v14 }
  0x33   :  { %455 = vmatpush.msrb.mxu2 %v1415_v32  ;;  %510 = vmatpush.msrb.mxu3 %v509_v37  ;;  %v1572_v48 = vand.u32 4294901760, %v71_v15 }
  0x34   :  { %361 = vmatpush.msrb.mxu0 %v2065_v16  ;;  %247 = vmatpush.msra.mxu1 %v246_v62  ;;  %v526_v60 = vsub.f32 %v1509_v24, %v2066_v34  ;;  %v532_v62 = vsub.f32 %v1515_v23, %v2068_v22  ;;  %v105_v16 = vld.sshfl [vmem:[#allocation1] sm:$0xff pattern:$0x75316420] }
  0x35   :  { %457 = vmatpush.msrb.mxu2 %v1438_v55  ;;  %v70_v22 = vld [vmem:[#allocation7 + $0x90] sm:$0xff]  ;;  %516 = vmatpush.msrb.mxu3 %v515_v1  ;;  %v1585_v34 = vand.u32 4294901760, %v105_v16  ;;  %v2072_v1 = vand.u32 4294901760, %v1545_v47  ;;  %v1598_v14 = vsub.f32 %v71_v15, %v1572_v48 }
  0x36   :  { %365 = vmatpush.msrb.mxu0 %v2067_v19  ;;  %416 = vmatpush.msrb.mxu1 %v1278_v3  ;;  %v2070_v3 = vand.u32 4294901760, %v1528_v36  ;;  %v527_v37 = vand.u32 4294901760, %v526_v60  ;;  %v1595_v7 = vand.u32 4294901760, %v70_v22 }
  0x37   :  { %459 = vmatpush.msrb.mxu2 %v1453_v13  ;;  %522 = vmatpush.msrb.mxu3 %v521_v63  ;;  %v544_v60 = vsub.f32 %v1545_v47, %v2072_v1  ;;  %v1609_v1 = vsub.f32 %v105_v16, %v1585_v34 }
  0x38   :  { %369 = vmatpush.msrb.mxu0 %v2069_v20  ;;  %418 = vmatpush.msrb.mxu1 %v1280_v4  ;;  %v538_v19 = vsub.f32 %v1528_v36, %v2070_v3  ;;  %v533_v4 = vand.u32 4294901760, %v532_v62  ;;  %v69_v20 = vld [vmem:[#allocation7 + $0x88] sm:$0xff]  ;;  %v2074_v62 = vand.u32 4294901760, %v1557_v6  ;;  %v68_v3 = vld [vmem:[#allocation7 + $0x80] sm:$0xff]  ;;  %v1622_v16 = vsub.f32 %v70_v22, %v1595_v7 }
  0x39   :  { %461 = vmatpush.msrb.mxu2 %v1466_v8  ;;  %528 = vmatpush.msrb.mxu3 %v527_v37  ;;  %v1611_v15 = vand.u32 4294901760, %v69_v20  ;;  %v1627_v46 = vand.u32 4294901760, %v68_v3 }
  0x3a   :  { %373 = vmatpush.msrb.mxu0 %v2071_v21  ;;  %420 = vmatpush.msrb.mxu1 %v1282_v5  ;;  %v539_v5 = vand.u32 4294901760, %v538_v19  ;;  %v550_v63 = vsub.f32 %v1557_v6, %v2074_v62  ;;  %v561_v21 = vand.u32 4294901760, %v1583_v43  ;;  %v2076_v19 = vand.u32 4294901760, %v1570_v49 }
  0x3b   :  { %463 = vmatpush.msrb.mxu2 %v1479_v51  ;;  %534 = vmatpush.msrb.mxu3 %v533_v4  ;;  %v2077_v62 = vand.u32 4294901760, %v1371_v52  ;;  %v1635_v22 = vsub.f32 %v69_v20, %v1611_v15  ;;  %v2078_v52 = vand.u32 4294901760, %v1376_v53  ;;  %v1649_v53 = vsub.f32 %v68_v3, %v1627_v46 }
  0x3c   :  { %377 = vmatpush.msrb.mxu0 %v2073_v29  ;;  %422 = vmatpush.msrb.mxu1 %v1284_v9  ;;  %v545_v9 = vand.u32 4294901760, %v544_v60  ;;  %v556_v37 = vsub.f32 %v1570_v49, %v2076_v19  ;;  %v567_v29 = vand.u32 4294901760, %v1598_v14  ;;  %v562_v4 = vsub.f32 %v1583_v43, %v561_v21 }
  0x3d   :  { %465 = vmatpush.msrb.mxu2 %v1486_v61  ;;  %540 = vmatpush.msrb.mxu3 %v539_v5  ;;  %v145_v60 = vand.u32 4294901760, %v1609_v1  ;;  %v2079_v19 = vand.u32 4294901760, %v1395_v2  ;;  %v2081_v3 = vand.u32 4294901760, %v1423_v42  ;;  %v2083_v42 = vand.u32 4294901760, %v1443_v56 }
  0x3e   :  { %381 = vmatpush.msrb.mxu0 %v2075_v40  ;;  %424 = vmatpush.msrb.mxu1 %v1286_v10  ;;  %v551_v10 = vand.u32 4294901760, %v550_v63  ;;  %v557_v5 = vand.u32 4294901760, %v556_v37  ;;  %v568_v63 = vsub.f32 %v1598_v14, %v567_v29  ;;  %v573_v40 = vand.u32 4294901760, %v1622_v16 }
  0x3f   :  { %467 = vmatpush.msrb.mxu2 %v1501_v27  ;;  %546 = vmatpush.msrb.mxu3 %v545_v9  ;;  %v146_v20 = vsub.f32 %v1609_v1, %v145_v60  ;;  %v579_v9 = vand.u32 4294901760, %v1635_v22 }
  0x40   :  { %385 = vmatpush.msrb.mxu0 %v2077_v62  ;;  %426 = vmatpush.msrb.mxu1 %v1288_v11  ;;  %v106_v11 = vld.sshfl [vmem:[#allocation1 + $0x8] sm:$0xff pattern:$0x75316420]  ;;  %v2080_v62 = vand.u32 4294901760, %v1409_v30  ;;  %v574_v2 = vsub.f32 %v1622_v16, %v573_v40 }
  0x41   :  { %469 = vmatpush.msrb.mxu2 %v1522_v38  ;;  %552 = vmatpush.msrb.mxu3 %v551_v10  ;;  %v1654_v37 = vand.u32 4294901760, %v106_v11  ;;  %v585_v10 = vand.u32 4294901760, %v1649_v53  ;;  %v147_v30 = vand.u32 4294901760, %v146_v20 }
  0x42   :  { %389 = vmatpush.msrb.mxu0 %v2078_v52  ;;  %428 = vmatpush.msrb.mxu1 %v1301_v17  ;;  %v563_v17 = vand.u32 4294901760, %v562_v4  ;;  %v2082_v52 = vand.u32 4294901760, %v1436_v54 }
  0x43   :  { %471 = vmatpush.msrb.mxu2 %v1535_v31  ;;  %558 = vmatpush.msrb.mxu3 %v557_v5  ;;  %v1672_v4 = vsub.f32 %v106_v11, %v1654_v37  ;;  %v586_v5 = vsub.f32 %v1649_v53, %v585_v10 }
  0x44   :  { %393 = vmatpush.msrb.mxu0 %v2079_v19  ;;  %430 = vmatpush.msrb.mxu1 %v1317_v25  ;;  %v569_v25 = vand.u32 4294901760, %v568_v63 }
  0x45   :  { %473 = vmatpush.msrb.mxu2 %v1547_v18  ;;  %564 = vmatpush.msrb.mxu3 %v563_v17  ;;  %v486_v11 = vand.u32 4294901760, %v1672_v4 }
  0x46   :  { %397 = vmatpush.msrb.mxu0 %v2080_v62  ;;  %432 = vmatpush.msrb.mxu1 %v1321_v28  ;;  %v580_v28 = vsub.f32 %v1635_v22, %v579_v9 }
  0x47   :  { %475 = vmatpush.msrb.mxu2 %v1559_v45  ;;  %570 = vmatpush.msrb.mxu3 %v569_v25 }
  0x48   :  { %401 = vmatpush.msrb.mxu0 %v2081_v3  ;;  %434 = vmatpush.msrb.mxu1 %v1339_v35  ;;  %v575_v35 = vand.u32 4294901760, %v574_v2  ;;  %v581_v54 = vand.u32 4294901760, %v580_v28 }
  0x49   :  { %477 = vmatpush.msrb.mxu2 %v1572_v48  ;;  %148 = vmatmul.f32.vlgmr.msra.gmra.mxu0 %v147_v30 }
  0x4a   :  { %405 = vmatpush.msrb.mxu0 %v2082_v52  ;;  %436 = vmatpush.msrb.mxu1 %v1351_v41  ;;  %v587_v41 = vand.u32 4294901760, %v586_v5 }
  0x4b   :  { %479 = vmatpush.msrb.mxu2 %v1595_v7  ;;  %576 = vmatpush.msrb.mxu3 %v575_v35 }
  0x4c   :  { %409 = vmatpush.msrb.mxu0 %v2083_v42  ;;  %438 = vmatpush.msrb.mxu1 %v1367_v50  ;;  %v487_v50 = vsub.f32 %v1672_v4, %v486_v11 }
  0x4d   :  { %481 = vmatpush.msrb.mxu2 %v1611_v15  ;;  %582 = vmatpush.msrb.mxu3 %v581_v54 }
  0x4e   :  { %596 = vmatpush.msra.mxu0 %v1431_v44  ;;  %440 = vmatpush.msrb.mxu1 %v1382_v58  ;;  %v2084_v58 = vand.u32 4294901760, %v1431_v44  ;;  %v488_v56 = vand.u32 4294901760, %v487_v50  ;;  %v2087_v44 = vand.u32 4294901760, %v1464_v39  ;;  %v87_v50 = vld [vmem:[#allocation7 + $0x118] sm:$0xff] }
  0x4f   :  { %303 = vmatmul.f32.vlgmr.msra.gmra.mxu2 %v1609_v1  ;;  %342 = vmatmul.f32.vlgmr.msra.gmra.mxu3 %v145_v60  ;;  %v2086_v1 = vld [vmem:[#allocation13_spill] sm:$0xff] }
  0x50   :  { %599 = vmatpush.msra.mxu0 %v1446_v57  ;;  %442 = vmatpush.msrb.mxu1 %v1391_v0  ;;  %v2085_v0 = vand.u32 4294901760, %v1446_v57  ;;  %v97_v57 = vld [vmem:[#allocation7 + $0x168] sm:$0xff]  ;;  %v92_v60 = vld [vmem:[#allocation7 + $0x140] sm:$0xff] }
  0x51   :  { %483 = vmatpush.msrb.mxu2 %v1627_v46  ;;  %588 = vmatpush.msrb.mxu3 %v587_v41 }
  0x52   :  { %602 = vmatpush.msra.mxu0 %v1464_v39  ;;  %444 = vmatpush.msrb.mxu1 %v1406_v26  ;;  %v2088_v26 = vand.u32 4294901760, %v1477_v59  ;;  %v2093_v39 = vand.u32 4294901760, %v1545_v47 }
  0x53   :  { %690 = vmatpush.msra.mxu2 %v2084_v58  ;;  %249 = vmatmul.f32.vlgmr.msra.gmra.mxu1 %v1585_v34 }
  0x54   :  { %605 = vmatpush.msra.mxu0 %v1477_v59  ;;  %757 = vmatpush.msra.mxu3 %v1400_v12  ;;  %v2090_v59 = vand.u32 4294901760, %v1509_v24 }
  0x55   :  { %694 = vmatpush.msra.mxu2 %v2085_v0  ;;  %446 = vmatpush.msrb.mxu1 %v2086_v1 }
  0x56   :  { %608 = vmatpush.msra.mxu0 %v1494_v33  ;;  %759 = vmatpush.msra.mxu3 %v1415_v32 }
  0x57   :  { %649 = vmatpush.msra.mxu1 %v1400_v12  ;;  %698 = vmatpush.msra.mxu2 %v2087_v44  ;;  %v2089_v12 = vand.u32 4294901760, %v1494_v33  ;;  %v2091_v33 = vand.u32 4294901760, %v1515_v23 }
  0x58   :  { %489 = vmatmul.f32.vlgmr.msrb.gmra.mxu2 %v488_v56  ;;  %611 = vmatpush.msra.mxu0 %v1509_v24  ;;  %v2092_v24 = vand.u32 4294901760, %v1528_v36 }
  0x59   :  { %651 = vmatpush.msra.mxu1 %v1415_v32  ;;  %702 = vmatpush.msra.mxu2 %v2088_v26  ;;  %v51_v32 = vld [vmem:[#allocation4 + $0x8] sm:$0xf]  ;;  %v86_v26 = vld [vmem:[#allocation7 + $0x110] sm:$0xff] }
  0x5a   :  { %761 = vmatpush.msra.mxu3 %v1438_v55  ;;  %411 = vmatmul.f32.vlgmr.msrb.gmra.mxu0 %v1585_v34  ;;  %104 = vst [vmem:[#allocation1 + $0x10] ss:$2 sm:$0xff] %v51_v32  ;;  %v1885_v32 = vand.u32 4294901760, %v87_v50 }
  0x5b   :  { %590 = vmatmul.f32.vlgmr.msrb.gmra.mxu3 %v1654_v37  ;;  %614 = vmatpush.msra.mxu0 %v1515_v23  ;;  %v98_v23 = vld [vmem:[#allocation7 + $0x170] sm:$0xff] }
  0x5c   :  { %653 = vmatpush.msra.mxu1 %v1438_v55  ;;  %706 = vmatpush.msra.mxu2 %v2089_v12 }
  0x5d   :  { %763 = vmatpush.msra.mxu3 %v1453_v13  ;;  %448 = vmatmul.f32.vlgmr.msrb.gmra.mxu1 %v1585_v34  ;;  %v94_v34 = vld [vmem:[#allocation7 + $0x150] sm:$0xff] }
  0x5e   :  { %617 = vmatpush.msra.mxu0 %v1528_v36  ;;  %655 = vmatpush.msra.mxu1 %v1453_v13  ;;  %v2095_v13 = vand.u32 4294901760, %v1570_v49  ;;  %v1762_v36 = vand.u32 4294901760, %v97_v57 }
  0x5f   :  { %710 = vmatpush.msra.mxu2 %v2090_v59  ;;  %765 = vmatpush.msra.mxu3 %v1466_v8 }
  0x60   :  { %620 = vmatpush.msra.mxu0 %v1545_v47  ;;  %657 = vmatpush.msra.mxu1 %v1466_v8  ;;  %v99_v8 = vld [vmem:[#allocation7 + $0x178] sm:$0xff] }
  0x61   :  { %714 = vmatpush.msra.mxu2 %v2091_v33  ;;  %767 = vmatpush.msra.mxu3 %v1479_v51  ;;  %v1748_v55 = vand.u32 4294901760, %v99_v8  ;;  %v95_v47 = vld [vmem:[#allocation7 + $0x158] sm:$0xff] }
  0x62   :  { %623 = vmatpush.msra.mxu0 %v1557_v6  ;;  %659 = vmatpush.msra.mxu1 %v1479_v51  ;;  %v2094_v51 = vand.u32 4294901760, %v1557_v6 }
  0x63   :  { %718 = vmatpush.msra.mxu2 %v2092_v24  ;;  %769 = vmatpush.msra.mxu3 %v1486_v61 }
  0x64   :  { %626 = vmatpush.msra.mxu0 %v1570_v49  ;;  %661 = vmatpush.msra.mxu1 %v1486_v61  ;;  %v1755_v61 = vand.u32 4294901760, %v98_v23 }
  0x65   :  { %722 = vmatpush.msra.mxu2 %v2093_v39  ;;  %771 = vmatpush.msra.mxu3 %v1501_v27  ;;  %v85_v39 = vld [vmem:[#allocation7 + $0x108] sm:$0xff] }
  0x66   :  { %629 = vmatpush.msra.mxu0 %v1583_v43  ;;  %663 = vmatpush.msra.mxu1 %v1501_v27  ;;  %v96_v27 = vld [vmem:[#allocation7 + $0x160] sm:$0xff]  ;;  %v1775_v6 = vsub.f32 %v98_v23, %v1755_v61  ;;  %v93_v43 = vld [vmem:[#allocation7 + $0x148] sm:$0xff] }
  0x67   :  { %726 = vmatpush.msra.mxu2 %v2094_v51  ;;  %773 = vmatpush.msra.mxu3 %v1522_v38  ;;  %v1897_v51 = vand.u32 4294901760, %v86_v26 }
  0x68   :  { %632 = vmatpush.msra.mxu0 %v1598_v14  ;;  %665 = vmatpush.msra.mxu1 %v1522_v38  ;;  %v1765_v38 = vsub.f32 %v99_v8, %v1748_v55  ;;  %v1786_v14 = vsub.f32 %v97_v57, %v1762_v36 }
  0x69   :  { %730 = vmatpush.msra.mxu2 %v2095_v13  ;;  %775 = vmatpush.msra.mxu3 %v1535_v31 }
  0x6a   :  { %635 = vmatpush.msra.mxu0 %v1622_v16  ;;  %667 = vmatpush.msra.mxu1 %v1535_v31  ;;  %v1772_v31 = vand.u32 4294901760, %v96_v27  ;;  %v836_v49 = vand.u32 4294901760, %v1765_v38  ;;  %v1801_v16 = vand.u32 4294901760, %v93_v43 }
  0x6b   :  { %734 = vmatpush.msra.mxu2 %v561_v21  ;;  %777 = vmatpush.msra.mxu3 %v1547_v18  ;;  %v1790_v21 = vand.u32 4294901760, %v94_v34 }
  0x6c   :  { %638 = vmatpush.msra.mxu0 %v1635_v22  ;;  %669 = vmatpush.msra.mxu1 %v1547_v18  ;;  %v1782_v18 = vand.u32 4294901760, %v95_v47  ;;  %v848_v22 = vand.u32 4294901760, %v1786_v14  ;;  %v1829_v20 = vsub.f32 %v93_v43, %v1801_v16  ;;  %v1912_v43 = vand.u32 4294901760, %v85_v39 }
  0x6d   :  { %738 = vmatpush.msra.mxu2 %v567_v29  ;;  %779 = vmatpush.msra.mxu3 %v1559_v45  ;;  %v1797_v29 = vsub.f32 %v96_v27, %v1772_v31 }
  0x6e   :  { %641 = vmatpush.msra.mxu0 %v1649_v53  ;;  %671 = vmatpush.msra.mxu1 %v1559_v45  ;;  %v842_v45 = vand.u32 4294901760, %v1775_v6  ;;  %v1811_v63 = vsub.f32 %v95_v47, %v1782_v18  ;;  %v1823_v53 = vand.u32 4294901760, %v92_v60  ;;  %v849_v25 = vsub.f32 %v1786_v14, %v848_v22 }
  0x6f   :  { %742 = vmatpush.msra.mxu2 %v573_v40  ;;  %781 = vmatpush.msra.mxu3 %v1572_v48  ;;  %v91_v40 = vld [vmem:[#allocation7 + $0x138] sm:$0xff]  ;;  %v854_v17 = vand.u32 4294901760, %v1797_v29  ;;  %v872_v35 = vand.u32 4294901760, %v1829_v20 }
  0x70   :  { %644 = vmatmul.f32.vlgmr.msra.gmra.mxu0 %v1672_v4  ;;  %673 = vmatpush.msra.mxu1 %v1572_v48  ;;  %v837_v48 = vsub.f32 %v1765_v38, %v836_v49  ;;  %v843_v19 = vsub.f32 %v1775_v6, %v842_v45  ;;  %v1836_v2 = vand.u32 4294901760, %v91_v40  ;;  %v860_v3 = vand.u32 4294901760, %v1811_v63  ;;  %v107_v4 = vld.sshfl [vmem:[#allocation1 + $0x10] sm:$0xff pattern:$0x75316420] }
  0x71   :  { %794 = vmatpush.msrb.mxu0 %v1748_v55  ;;  %746 = vmatpush.msra.mxu2 %v579_v9  ;;  %v90_v9 = vld [vmem:[#allocation7 + $0x130] sm:$0xff]  ;;  %v855_v30 = vsub.f32 %v1797_v29, %v854_v17  ;;  %v1850_v52 = vsub.f32 %v92_v60, %v1823_v53  ;;  %v850_v42 = vand.u32 4294901760, %v849_v25  ;;  %v873_v44 = vsub.f32 %v1829_v20, %v872_v35 }
  0x72   :  { %783 = vmatpush.msra.mxu3 %v1595_v7  ;;  %675 = vmatpush.msra.mxu1 %v1595_v7  ;;  %v1816_v7 = vsub.f32 %v94_v34, %v1790_v21  ;;  %v838_v62 = vand.u32 4294901760, %v837_v48  ;;  %v1847_v28 = vand.u32 4294901760, %v90_v9  ;;  %v861_v5 = vsub.f32 %v1811_v63, %v860_v3 }
  0x73   :  { %796 = vmatpush.msrb.mxu0 %v1755_v61  ;;  %750 = vmatpush.msra.mxu2 %v585_v10  ;;  %v89_v10 = vld [vmem:[#allocation7 + $0x128] sm:$0xff]  ;;  %v1863_v41 = vsub.f32 %v91_v40, %v1836_v2  ;;  %v856_v58 = vand.u32 4294901760, %v855_v30  ;;  %v878_v56 = vand.u32 4294901760, %v1850_v52  ;;  %v1882_v12 = vand.u32 4294901760, %v107_v4  ;;  %v84_v40 = vld [vmem:[#allocation7 + $0x100] sm:$0xff] }
  0x74   :  { %785 = vmatpush.msra.mxu3 %v1611_v15  ;;  %752 = vmatmul.f32.vlgmr.msra.gmra.mxu2 %v1654_v37  ;;  %v1860_v54 = vand.u32 4294901760, %v89_v10  ;;  %v1875_v1 = vsub.f32 %v90_v9, %v1847_v28  ;;  %v862_v59 = vand.u32 4294901760, %v861_v5  ;;  %v874_v27 = vand.u32 4294901760, %v873_v44 }
  0x75   :  { %798 = vmatpush.msrb.mxu0 %v1762_v36  ;;  %937 = vmatpush.msrb.mxu2 %v1765_v38  ;;  %v884_v33 = vand.u32 4294901760, %v1863_v41  ;;  %v879_v23 = vsub.f32 %v1850_v52, %v878_v56  ;;  %v1906_v47 = vsub.f32 %v107_v4, %v1882_v12  ;;  %v1916_v48 = vsub.f32 %v87_v50, %v1885_v32 }
  0x76   :  { %677 = vmatpush.msra.mxu1 %v1611_v15  ;;  %787 = vmatpush.msra.mxu3 %v1627_v46  ;;  %v866_v15 = vand.u32 4294901760, %v1816_v7  ;;  %v1889_v24 = vsub.f32 %v89_v10, %v1860_v54  ;;  %v890_v57 = vand.u32 4294901760, %v1875_v1  ;;  %v1926_v25 = vsub.f32 %v86_v26, %v1897_v51 }
  0x77   :  { %789 = vmatmul.f32.vlgmr.msra.gmra.mxu3 %v1654_v37  ;;  %800 = vmatpush.msrb.mxu0 %v1772_v31  ;;  %v844_v37 = vand.u32 4294901760, %v843_v19  ;;  %v885_v34 = vsub.f32 %v1863_v41, %v884_v33  ;;  %v880_v19 = vand.u32 4294901760, %v879_v23  ;;  %v1930_v10 = vand.u32 4294901760, %v84_v40 }
  0x78   :  { %940 = vmatpush.msrb.mxu2 %v1775_v6  ;;  %990 = vmatpush.msrb.mxu3 %v1748_v55  ;;  %v896_v60 = vand.u32 4294901760, %v1889_v24  ;;  %v891_v9 = vsub.f32 %v1875_v1, %v890_v57  ;;  %v1939_v5 = vsub.f32 %v85_v39, %v1912_v43  ;;  %v914_v50 = vand.u32 4294901760, %v1926_v25 }
  0x79   :  { %679 = vmatpush.msra.mxu1 %v1627_v46  ;;  %802 = vmatpush.msrb.mxu0 %v1782_v18  ;;  %v88_v46 = vld [vmem:[#allocation7 + $0x120] sm:$0xff]  ;;  %v886_v30 = vand.u32 4294901760, %v885_v34  ;;  %v1952_v44 = vsub.f32 %v84_v40, %v1930_v10 }
  0x7a   :  { %683 = vmatmul.f32.vlgmr.msra.gmra.mxu1 %v486_v11  ;;  %943 = vmatpush.msrb.mxu2 %v1786_v14  ;;  %v867_v11 = vsub.f32 %v1816_v7, %v866_v15  ;;  %v1871_v0 = vand.u32 4294901760, %v88_v46  ;;  %v892_v4 = vand.u32 4294901760, %v891_v9  ;;  %v915_v23 = vsub.f32 %v1926_v25, %v914_v50 }
  0x7b   :  { %839 = vmatpush.msrb.mxu1 %v838_v62  ;;  %992 = vmatpush.msrb.mxu3 %v1755_v61  ;;  %v926_v34 = vand.u32 4294901760, %v1952_v44 }
  0x7c   :  { %804 = vmatpush.msrb.mxu0 %v1790_v21  ;;  %946 = vmatpush.msrb.mxu2 %v1797_v29  ;;  %v868_v8 = vand.u32 4294901760, %v867_v11  ;;  %v1901_v13 = vsub.f32 %v88_v46, %v1871_v0  ;;  %v897_v46 = vsub.f32 %v1889_v24, %v896_v60  ;;  %v916_v9 = vand.u32 4294901760, %v915_v23 }
  0x7d   :  { %845 = vmatpush.msrb.mxu1 %v844_v37  ;;  %994 = vmatpush.msrb.mxu3 %v1762_v36  ;;  %v827_v37 = vand.u32 4294901760, %v1906_v47 }
  0x7e   :  { %806 = vmatpush.msrb.mxu0 %v1801_v16  ;;  %949 = vmatpush.msrb.mxu2 %v1811_v63  ;;  %v902_v62 = vand.u32 4294901760, %v1901_v13  ;;  %v898_v26 = vand.u32 4294901760, %v897_v46 }
  0x7f   :  { %851 = vmatpush.msrb.mxu1 %v850_v42  ;;  %996 = vmatpush.msrb.mxu3 %v1772_v31  ;;  %v908_v42 = vand.u32 4294901760, %v1916_v48 }
  0x80   :  { %808 = vmatpush.msrb.mxu0 %v1823_v53  ;;  %952 = vmatpush.msrb.mxu2 %v1816_v7  ;;  %v903_v11 = vsub.f32 %v1901_v13, %v902_v62 }
  0x81   :  { %857 = vmatpush.msrb.mxu1 %v856_v58  ;;  %998 = vmatpush.msrb.mxu3 %v1782_v18  ;;  %v828_v58 = vsub.f32 %v1906_v47, %v827_v37 }
  0x82   :  { %810 = vmatpush.msrb.mxu0 %v1836_v2  ;;  %955 = vmatpush.msrb.mxu2 %v1829_v20  ;;  %v904_v39 = vand.u32 4294901760, %v903_v11 }
  0x83   :  { %863 = vmatpush.msrb.mxu1 %v862_v59  ;;  %1000 = vmatpush.msrb.mxu3 %v1790_v21  ;;  %v909_v59 = vsub.f32 %v1916_v48, %v908_v42 }
  0x84   :  { %812 = vmatpush.msrb.mxu0 %v1847_v28  ;;  %958 = vmatpush.msrb.mxu2 %v1850_v52 }
  0x85   :  { %869 = vmatpush.msrb.mxu1 %v868_v8  ;;  %1002 = vmatpush.msrb.mxu3 %v1801_v16  ;;  %v920_v8 = vand.u32 4294901760, %v1939_v5  ;;  %v910_v40 = vand.u32 4294901760, %v909_v59 }
  0x86   :  { %814 = vmatpush.msrb.mxu0 %v1860_v54  ;;  %961 = vmatpush.msrb.mxu2 %v1863_v41 }
  0x87   :  { %875 = vmatpush.msrb.mxu1 %v874_v27  ;;  %1004 = vmatpush.msrb.mxu3 %v1823_v53  ;;  %v829_v27 = vand.u32 4294901760, %v828_v58 }
  0x88   :  { %816 = vmatpush.msrb.mxu0 %v1871_v0  ;;  %964 = vmatpush.msrb.mxu2 %v1875_v1 }
  0x89   :  { %881 = vmatpush.msrb.mxu1 %v880_v19  ;;  %1006 = vmatpush.msrb.mxu3 %v1836_v2  ;;  %v921_v19 = vsub.f32 %v1939_v5, %v920_v8 }
  0x8a   :  { %818 = vmatpush.msrb.mxu0 %v1885_v32  ;;  %967 = vmatpush.msrb.mxu2 %v1889_v24 }
  0x8b   :  { %887 = vmatpush.msrb.mxu1 %v886_v30  ;;  %1008 = vmatpush.msrb.mxu3 %v1847_v28  ;;  %v927_v30 = vsub.f32 %v1952_v44, %v926_v34  ;;  %v922_v46 = vand.u32 4294901760, %v921_v19 }
  0x8c   :  { %820 = vmatpush.msrb.mxu0 %v1897_v51  ;;  %970 = vmatpush.msrb.mxu2 %v1901_v13  ;;  %v1138_v13 = vstv %s2037_s1 }
  0x8d   :  { %893 = vmatpush.msrb.mxu1 %v892_v4  ;;  %1010 = vmatpush.msrb.mxu3 %v1860_v54 }
  0x8e   :  { %822 = vmatpush.msrb.mxu0 %v1912_v43  ;;  %973 = vmatpush.msrb.mxu2 %v1916_v48 }
  0x8f   :  { %899 = vmatpush.msrb.mxu1 %v898_v26  ;;  %1012 = vmatpush.msrb.mxu3 %v1871_v0 }
  0x90   :  { %824 = vmatpush.msrb.mxu0 %v1930_v10  ;;  %976 = vmatpush.msrb.mxu2 %v1926_v25 }
  0x91   :  { %905 = vmatpush.msrb.mxu1 %v904_v39  ;;  %1014 = vmatpush.msrb.mxu3 %v1885_v32 }
  0x92   :  { %830 = vmatmul.f32.vlgmr.msrb.gmra.mxu0 %v829_v27  ;;  %979 = vmatpush.msrb.mxu2 %v1939_v5  ;;  %v928_v5 = vand.u32 4294901760, %v927_v30 }
  0x93   :  { %1031 = vmatpush.msra.mxu0 %v836_v49  ;;  %911 = vmatpush.msrb.mxu1 %v910_v40 }
  0x94   :  { %1016 = vmatpush.msrb.mxu3 %v1897_v51  ;;  %982 = vmatpush.msrb.mxu2 %v1952_v44 }
  0x95   :  { %1035 = vmatpush.msra.mxu0 %v842_v45  ;;  %917 = vmatpush.msrb.mxu1 %v916_v9 }
  0x96   :  { %1018 = vmatpush.msrb.mxu3 %v1912_v43  ;;  %985 = vmatmul.f32.vlgmr.msrb.gmra.mxu2 %v1906_v47 }
  0x97   :  { %1039 = vmatpush.msra.mxu0 %v848_v22  ;;  %923 = vmatpush.msrb.mxu1 %v922_v46 }
  0x98   :  { %1020 = vmatpush.msrb.mxu3 %v1930_v10 }
  0x99   :  { %1024 = vmatmul.f32.vlgmr.msrb.gmra.mxu3 %v827_v37  ;;  %1043 = vmatpush.msra.mxu0 %v854_v17 }
  0x9a   :  { %929 = vmatpush.msrb.mxu1 %v928_v5 }
  0x9b   :  { %931 = vmatmul.f32.vlgmr.msrb.gmra.mxu1 %v1882_v12  ;;  %1047 = vmatpush.msra.mxu0 %v860_v3 }
  0x9c   :  { %1098 = vmatpush.msra.mxu1 %v1748_v55 }
  0x9d   :  { %1051 = vmatpush.msra.mxu0 %v866_v15 }
  0x9e   :  { %1100 = vmatpush.msra.mxu1 %v1755_v61 }
  0x9f   :  { %1055 = vmatpush.msra.mxu0 %v872_v35 }
  0xa0   :  { %1102 = vmatpush.msra.mxu1 %v1762_v36 }
  0xa1   :  { %1059 = vmatpush.msra.mxu0 %v878_v56 }
  0xa2   :  { %1104 = vmatpush.msra.mxu1 %v1772_v31 }
  0xa3   :  { %1063 = vmatpush.msra.mxu0 %v884_v33 }
  0xa4   :  { %1106 = vmatpush.msra.mxu1 %v1782_v18 }
  0xa5   :  { %1067 = vmatpush.msra.mxu0 %v890_v57 }
  0xa6   :  { %1108 = vmatpush.msra.mxu1 %v1790_v21 }
  0xa7   :  { %1071 = vmatpush.msra.mxu0 %v896_v60 }
  0xa8   :  { %1110 = vmatpush.msra.mxu1 %v1801_v16 }
  0xa9   :  { %1075 = vmatpush.msra.mxu0 %v902_v62 }
  0xaa   :  { %1112 = vmatpush.msra.mxu1 %v1823_v53 }
  0xab   :  { %1079 = vmatpush.msra.mxu0 %v908_v42 }
  0xac   :  { %1114 = vmatpush.msra.mxu1 %v1836_v2 }
  0xad   :  { %1083 = vmatpush.msra.mxu0 %v914_v50 }
  0xae   :  { %1116 = vmatpush.msra.mxu1 %v1847_v28 }
  0xaf   :  { %1087 = vmatpush.msra.mxu0 %v920_v8 }
  0xb0   :  { %1118 = vmatpush.msra.mxu1 %v1860_v54 }
  0xb1   :  { %1091 = vmatpush.msra.mxu0 %v926_v34 }
  0xb2   :  { %1120 = vmatpush.msra.mxu1 %v1871_v0  ;;  %1093 = vmatmul.f32.vlgmr.msra.gmra.mxu0 %v1882_v12 }
  0xb4   :  { %1122 = vmatpush.msra.mxu1 %v1885_v32 }
  0xb6   :  { %1124 = vmatpush.msra.mxu1 %v1897_v51  ;;  %v1135_v51 = vstv %s2036_s0 }
  0xb8   :  { %1126 = vmatpush.msra.mxu1 %v1912_v43 }
  0xba   :  { %1128 = vmatpush.msra.mxu1 %v1930_v10 }
  0xbb   :  { %1130 = vmatmul.f32.vlgmr.msra.gmra.mxu1 %v1882_v12 }
  0xc6   :  { %v149_v61 = vpop.f32.mrf.mxu0 }
  0xd0   :  { %v250_v55 = vpop.f32.mrf.mxu1 }
  0xd1   :  { %v251_v36 = vadd.f32 %v250_v55, %v149_v61 }
  0xd2   :  { %v304_v38 = vpop.f32.mrf.mxu2  ;;  %v343_v6 = vpop.f32.mrf.mxu3 }
  0xd3   :  { %v305_v31 = vadd.f32 %v304_v38, %v251_v36 }
  0xd5   :  { %v344_v18 = vadd.f32 %v343_v6, %v305_v31 }
  0xd7   :  { %v412_v49 = vpop.f32.mrf.mxu0 }
  0xd8   :  { %v413_v14 = vadd.f32 %v412_v49, %v344_v18 }
  0xda   :  { %v449_v21 = vpop.f32.mrf.mxu1 }
  0xdb   :  { %v450_v45 = vadd.f32 %v449_v21, %v413_v14  ;;  %v490_v29 = vpop.f32.mrf.mxu2 }
  0xdd   :  { %v491_v16 = vadd.f32 %v490_v29, %v450_v45 }
  0xde   :  { %v591_v22 = vpop.f32.mrf.mxu3 }
  0xdf   :  { %v592_v7 = vadd.f32 %v591_v22, %v491_v16 }
  0xed   :  { %v645_v63 = vpop.f32.mrf.mxu0 }
  0xee   :  { %v646_v17 = vadd.f32 %v645_v63, %v592_v7 }
  0xf7   :  { %v684_v53 = vpop.f32.mrf.mxu1  ;;  %v753_v2 = vpop.f32.mrf.mxu2 }
  0xf8   :  { %v685_v20 = vadd.f32 %v684_v53, %v646_v17 }
  0xfa   :  { %v754_v3 = vadd.f32 %v753_v2, %v685_v20  ;;  %v790_v15 = vpop.f32.mrf.mxu3 }
  0xfc   :  { %v791_v52 = vadd.f32 %v790_v15, %v754_v3 }
 0x10f   :  { %v831_v28 = vpop.f32.mrf.mxu0 }
 0x110   :  { %v832_v54 = vadd.f32 %v831_v28, %v791_v52 }
 0x118   :  { %v932_v35 = vpop.f32.mrf.mxu1 }
 0x119   :  { %v933_v41 = vadd.f32 %v932_v35, %v832_v54  ;;  %v986_v0 = vpop.f32.mrf.mxu2 }
 0x11b   :  { %v987_v56 = vadd.f32 %v986_v0, %v933_v41 }
 0x11c   :  { %v1025_v1 = vpop.f32.mrf.mxu3 }
 0x11d   :  { %v1026_v32 = vadd.f32 %v1025_v1, %v987_v56 }
 0x12f   :  { %v1094_v12 = vpop.f32.mrf.mxu0 }
 0x130   :  { %v1095_v33 = vadd.f32 %v1094_v12, %v1026_v32 }
 0x138   :  { %v1131_v24 = vpop.f32.mrf.mxu1 }
 0x139   :  { %v1132_v57 = vadd.f32 %v1131_v24, %v1095_v33 }
 0x13b   :  { %v1136_v47 = vmul.f32 %v1135_v51, %v1132_v57 }
 0x13d   :  { %v1139_v43 = vadd.f32 %v1138_v13, %v1136_v47 }
 0x13f   :  { %1140 = vst [vmem:[#allocation9] sm:$0xf] %v1139_v43 }
 0x140   :  { %1151 = dma.vmem_to_hbm [thread:$0]  %s1147_s30, 64, %s1149_s7, [#allocation6]  }
 0x141   :  { %1240 = dma.done.wait [#allocation6], 64  }
 0x142   :  { %1241 = vsyncadd [#allocation6], 4294967232 }
 0x143   :  { %1156 = vsyncpa [#allocation5], 1 }
 0x144   :  { %1157 = vsyncpa [#allocation8], 1 }
 0x145   :  { %1158 = vsyncpa [#allocation6], 1 }

</bundles_post_ra>
